<compile_context>
chip_gen: v5e
topology: v5e:2x2
jax: 0.10.0
libtpu: 0.0.40
codegen_flags: <defaults>
</compile_context>

<pallas_src>
import functools
import math

import jax
import jax.numpy as jnp
from jax.experimental import pallas as pl
from jax.experimental.pallas import tpu as pltpu


# ---------------------------------------------------------------------------
# Kernel body
# ---------------------------------------------------------------------------
def _sdpa_body(q_ref, k_ref, v_ref, mask_ref, out_ref, attn_ref, *,
               inv_temperature, approx, mxu_dtype):
    # Fold 1/temperature into q (the smaller Nq x D tensor) before the MXU
    # cast; elementwise math stays in f32.
    q = q_ref[...].astype(jnp.float32) * jnp.float32(inv_temperature)
    qm = q.astype(mxu_dtype)                           # (BB, Nq, D)
    km = k_ref[...].astype(mxu_dtype)                  # (BB, Nk, D)

    # scores = (q / temperature) @ k^T : batched last-dim contraction
    # (no k transpose/relayout), MXU inputs in mxu_dtype, f32 accumulation.
    scores = jnp.einsum("bqd,bkd->bqk", qm, km,
                        preferred_element_type=jnp.float32)

    if mask_ref is not None:
        # masked_fill(pad_mask.unsqueeze(1), -1000.0): dense (BB, Nk) int8
        # mask broadcast over the Nq (sublane) axis.
        mask = mask_ref[...]
        scores = jnp.where((mask != 0)[:, None, :], jnp.float32(-1000.0),
                           scores)

    # Softmax over keys (max-subtracted, f32).
    m = jnp.max(scores, axis=-1, keepdims=True)
    e = jnp.exp(scores - m)
    denom = jnp.sum(e, axis=-1, keepdims=True)
    attn = e * pl.reciprocal(denom, approx=approx)

    # TODO(synk): nn.Dropout is identity in eval mode; training-mode dropout
    # (with torch RNG parity) is not reproduced here.

    out = jnp.einsum("bqk,bkd->bqd", attn.astype(mxu_dtype),
                     v_ref[...].astype(mxu_dtype),
                     preferred_element_type=jnp.float32)

    out_ref[...] = out.astype(out_ref.dtype)
    if attn_ref is not None:
        attn_ref[...] = attn.astype(attn_ref.dtype)


def _make_kernel(has_mask, emit_attn, inv_temperature, approx, mxu_dtype):
    body = functools.partial(_sdpa_body, inv_temperature=inv_temperature,
                             approx=approx, mxu_dtype=mxu_dtype)
    if has_mask and emit_attn:
        def kernel(q_ref, k_ref, v_ref, m_ref, out_ref, attn_ref):
            body(q_ref, k_ref, v_ref, m_ref, out_ref, attn_ref)
    elif has_mask:
        def kernel(q_ref, k_ref, v_ref, m_ref, out_ref):
            body(q_ref, k_ref, v_ref, m_ref, out_ref, None)
    elif emit_attn:
        def kernel(q_ref, k_ref, v_ref, out_ref, attn_ref):
            body(q_ref, k_ref, v_ref, None, out_ref, attn_ref)
    else:
        def kernel(q_ref, k_ref, v_ref, out_ref):
            body(q_ref, k_ref, v_ref, None, out_ref, None)
    return kernel


# ---------------------------------------------------------------------------
# VMEM-budget / block-size heuristics (generation aware)
# ---------------------------------------------------------------------------
def _tpu_vmem_limit_bytes():
    cap = 0
    try:
        info = pltpu.get_tpu_info()
        cap = int(getattr(info, "vmem_capacity_bytes", 0) or 0)
    except Exception:
        cap = 0
    if cap <= 0:
        cap = 64 * 1024 * 1024          # conservative (v7x-sized) fallback
    # ~96 MiB scoped limit on 128 MiB parts (v5e/v6e), ~48 MiB on v7x (64 MiB).
    return min((cap * 3) // 4, 96 * 1024 * 1024)


def _padded_tile_bytes(rows, cols, itemsize):
    sub = max(8, 32 // itemsize)        # sublane tile: 8 (f32) / 16 (bf16) / 32 (i8)
    r = -(-rows // sub) * sub
    c = -(-cols // 128) * 128
    return r * c * itemsize


def _per_batch_vmem_bytes(Nq, Nk, D, Dv, in_itemsize, out_itemsize,
                          has_mask, emit_attn, attn_itemsize):
    per = (_padded_tile_bytes(Nq, D, in_itemsize)
           + _padded_tile_bytes(Nk, D, in_itemsize)
           + _padded_tile_bytes(Nk, Dv, in_itemsize)
           + _padded_tile_bytes(Nq, Dv, out_itemsize)
           # f32 intermediates (scores / exp / probs) materialized in the body
           + 3 * _padded_tile_bytes(Nq, Nk, 4))
    if emit_attn:
        per += _padded_tile_bytes(Nq, Nk, attn_itemsize)
    if has_mask:
        per += -(-Nk // 128) * 128      # dense (bb, Nk) int8 row, lane-padded
    return per


def _round_block(bb, B):
    """Clamp bb so 2-D (bb, Nk) mask blocks stay sublane-aligned or full."""
    if bb >= B:
        return B
    if bb >= 8:
        return (bb // 8) * 8
    return min(8, B)


def _choose_block_b(B, per_b, working_budget):
    bb = max(1, int(working_budget // (2 * per_b)))    # double-buffered I/O
    if bb >= B:
        return B
    # Keep >= ~4 grid steps when the batch allows: with only 1-2 steps the
    # BlockSpec double-buffer never reaches steady state.
    bb = min(bb, max(1, -(-B // 4)))
    bb = _round_block(bb, B)
    # Prefer an even number of grid steps (v7x dual-TensorCore) when cheap.
    steps = -(-B // bb)
    if steps > 1 and steps % 2 == 1:
        alt = _round_block(-(-B // (steps + 1)), B)
        if 0 < alt < B and (-(-B // alt)) % 2 == 0:
            bb = alt
    return bb


# ---------------------------------------------------------------------------
# Public wrapper
# ---------------------------------------------------------------------------
def scaled_dot_product_attention(q, k, v, pad_mask=None, *, temperature,
                                 return_attn=True, mxu_dtype=jnp.bfloat16,
                                 approx_reciprocal=None, attn_dtype=None,
                                 block_b=None):
    """Pallas implementation of ScaledDotProductAttention.forward (eval mode).

    Returns (output, attn) like the PyTorch module when return_attn=True,
    otherwise just output.  Set mxu_dtype=jnp.float32 for strict f32 parity.
    """
    B, Nq, D = q.shape
    Bk, Nk, Dk = k.shape
    Bv, Nkv, Dv = v.shape
    assert (Bk, Dk) == (B, D) and (Bv, Nkv) == (B, Nk)

    has_mask = pad_mask is not None
    out_dtype = q.dtype
    if attn_dtype is None:
        attn_dtype = q.dtype
    if approx_reciprocal is None:
        # attn rows are user-visible when returned: keep them summing to 1
        # exactly; use the (free) EUP approximation on the output-only path.
        approx_reciprocal = not return_attn

    in_itemsize = q.dtype.itemsize
    out_itemsize = jnp.dtype(out_dtype).itemsize
    attn_itemsize = jnp.dtype(attn_dtype).itemsize

    vmem_limit = _tpu_vmem_limit_bytes()
    per_b = _per_batch_vmem_bytes(Nq, Nk, D, Dv, in_itemsize, out_itemsize,
                                  has_mask, return_attn, attn_itemsize)
    if block_b is None:
        bb = _choose_block_b(B, per_b, vmem_limit // 2)
    else:
        bb = _round_block(min(int(block_b), B), B)

    num_blocks = -(-B // bb)
    B_pad = num_blocks * bb

    if B_pad != B:
        pad3 = [(0, B_pad - B), (0, 0), (0, 0)]
        q = jnp.pad(q, pad3)
        k = jnp.pad(k, pad3)
        v = jnp.pad(v, pad3)

    inputs = [q, k, v]
    in_specs = [
        pl.BlockSpec((bb, Nq, D), lambda b: (b, 0, 0)),
        pl.BlockSpec((bb, Nk, D), lambda b: (b, 0, 0)),
        pl.BlockSpec((bb, Nk, Dv), lambda b: (b, 0, 0)),
    ]
    if has_mask:
        mask = pad_mask.astype(jnp.int8)                 # dense 2-D int8 mask
        if B_pad != B:
            mask = jnp.pad(mask, [(0, B_pad - B), (0, 0)])
        inputs.append(mask)
        in_specs.append(pl.BlockSpec((bb, Nk), lambda b: (b, 0)))

    out_struct = jax.ShapeDtypeStruct((B_pad, Nq, Dv), out_dtype)
    out_spec = pl.BlockSpec((bb, Nq, Dv), lambda b: (b, 0, 0))
    if return_attn:
        out_shape = (out_struct,
                     jax.ShapeDtypeStruct((B_pad, Nq, Nk), attn_dtype))
        out_specs = (out_spec, pl.BlockSpec((bb, Nq, Nk), lambda b: (b, 0, 0)))
    else:
        out_shape = out_struct
        out_specs = out_spec

    kernel = _make_kernel(has_mask, return_attn, 1.0 / float(temperature),
                          approx_reciprocal, mxu_dtype)

    # Advisory cost so XLA can overlap surrounding HLO with the custom call.
    bytes_accessed = ((q.size + k.size + v.size) * in_itemsize
                      + B_pad * Nq * Dv * out_itemsize)
    if has_mask:
        bytes_accessed += B_pad * Nk
    if return_attn:
        bytes_accessed += B_pad * Nq * Nk * attn_itemsize
    cost = pl.CostEstimate(flops=2 * B_pad * Nq * Nk * (D + Dv),
                           transcendentals=B_pad * Nq * Nk,
                           bytes_accessed=int(bytes_accessed))

    result = pl.pallas_call(
        kernel,
        out_shape=out_shape,
        grid_spec=pltpu.PrefetchScalarGridSpec(
            num_scalar_prefetch=0,
            grid=(num_blocks,),
            in_specs=in_specs,
            out_specs=out_specs,
        ),
        compiler_params=pltpu.CompilerParams(
            dimension_semantics=("parallel",),
            vmem_limit_bytes=vmem_limit,
        ),
        cost_estimate=cost,
    )(*inputs)

    # TODO(synk): return_comp=True (pre-softmax masked scores) is not emitted;
    # it would be a third output mirroring `scores` if ever needed.
    if return_attn:
        out, attn = result
        if B_pad != B:
            out, attn = out[:B], attn[:B]
        return out, attn
    out = result
    if B_pad != B:
        out = out[:B]
    return out


# ---------------------------------------------------------------------------
# Reference + self-test
# ---------------------------------------------------------------------------
def _reference(q, k, v, pad_mask, temperature):
    attn = jnp.einsum("bqd,bkd->bqk", q, k) / temperature
    if pad_mask is not None:
        attn = jnp.where(pad_mask[:, None, :], -1000.0, attn)
    attn = jax.nn.softmax(attn, axis=-1)
    out = jnp.einsum("bqk,bkd->bqd", attn, v)
    return out, attn


if __name__ == "__main__":
    B, Nq, Nk, D, Dv = 2, 8, 8, 32, 32
    temperature = math.sqrt(D)

    key = jax.random.PRNGKey(0)
    kq, kk, kv, km = jax.random.split(key, 4)
    q = jax.random.normal(kq, (B, Nq, D), dtype=jnp.float32)
    k = jax.random.normal(kk, (B, Nk, D), dtype=jnp.float32)
    v = jax.random.normal(kv, (B, Nk, Dv), dtype=jnp.float32)
    pad_mask = jax.random.bernoulli(km, p=0.25, shape=(B, Nk))

    ref_out, ref_attn = _reference(q, k, v, pad_mask, temperature)
    ref_out_nm, ref_attn_nm = _reference(q, k, v, None, temperature)

    # 1) Default fast path: masked, bf16 MXU inputs with f32 accumulation.
    out, attn = scaled_dot_product_attention(q, k, v, pad_mask,
                                             temperature=temperature)
    out = jax.block_until_ready(out)
    attn = jax.block_until_ready(attn)
    assert jnp.allclose(out, ref_out, atol=3e-2, rtol=3e-2)
    assert jnp.allclose(attn, ref_attn, atol=3e-2, rtol=3e-2)

    # 2) Strict-parity path: f32 MXU + exact reciprocal.
    out_x, attn_x = scaled_dot_product_attention(
        q, k, v, pad_mask, temperature=temperature,
        mxu_dtype=jnp.float32, approx_reciprocal=False)
    jax.block_until_ready(out_x)
    assert jnp.allclose(out_x, ref_out, atol=1e-4, rtol=1e-4)
    assert jnp.allclose(attn_x, ref_attn, atol=1e-4, rtol=1e-4)

    # 3) Unmasked specialization (no mask DMA / compare+select in the kernel).
    out_nm, attn_nm = scaled_dot_product_attention(
        q, k, v, None, temperature=temperature,
        mxu_dtype=jnp.float32, approx_reciprocal=False)
    jax.block_until_ready(out_nm)
    assert jnp.allclose(out_nm, ref_out_nm, atol=1e-4, rtol=1e-4)
    assert jnp.allclose(attn_nm, ref_attn_nm, atol=1e-4, rtol=1e-4)

    # 4) Output-only fast path (skips attn writeback, EUP approx reciprocal).
    out_only = scaled_dot_product_attention(
        q, k, v, pad_mask, temperature=temperature, return_attn=False)
    jax.block_until_ready(out_only)
    assert jnp.allclose(out_only, ref_out, atol=3e-2, rtol=3e-2)

    # 5) Ragged batch + explicit multi-block grid (padding path, dense int8
    #    mask block with a sublane-aligned second-minor dim).
    B2, Nq2, Nk2 = 20, 8, 16
    kq2, kk2, kv2, km2 = jax.random.split(jax.random.PRNGKey(1), 4)
    q2 = jax.random.normal(kq2, (B2, Nq2, D), dtype=jnp.float32)
    k2 = jax.random.normal(kk2, (B2, Nk2, D), dtype=jnp.float32)
    v2 = jax.random.normal(kv2, (B2, Nk2, Dv), dtype=jnp.float32)
    m2 = jax.random.bernoulli(km2, p=0.25, shape=(B2, Nk2))
    ref_out2, ref_attn2 = _reference(q2, k2, v2, m2, temperature)
    out2, attn2 = scaled_dot_product_attention(
        q2, k2, v2, m2, temperature=temperature,
        mxu_dtype=jnp.float32, approx_reciprocal=False, block_b=8)
    jax.block_until_ready(out2)
    assert out2.shape == (B2, Nq2, Dv) and attn2.shape == (B2, Nq2, Nk2)
    assert jnp.allclose(out2, ref_out2, atol=1e-4, rtol=1e-4)
    assert jnp.allclose(attn2, ref_attn2, atol=1e-4, rtol=1e-4)

    print("KERNEL_OK")
</pallas_src>

<mosaic_0001>
module attributes {stable_mosaic.version = 11 : i64} {
  func.func @kernel(%arg0: i32, %arg1: memref<2x8x32xf32, #tpu.memory_space<vmem>>, %arg2: memref<2x8x32xf32, #tpu.memory_space<vmem>>, %arg3: memref<2x8x32xf32, #tpu.memory_space<vmem>>, %arg4: memref<2x8xi8, #tpu.memory_space<vmem>>, %arg5: memref<2x8x32xf32, #tpu.memory_space<vmem>>, %arg6: memref<2x8x8xf32, #tpu.memory_space<vmem>>) attributes {dimension_semantics = [#tpu.dimension_semantics<parallel>], iteration_bounds = array<i64: 1>, scalar_prefetch = 0 : i64, scratch_operands = 0 : i64, tpu.core_type = #tpu.core_type<tc>, window_params = [{transform_indices = @transform_0, window_bounds = array<i64: 2, 8, 32>}, {transform_indices = @transform_1, window_bounds = array<i64: 2, 8, 32>}, {transform_indices = @transform_2, window_bounds = array<i64: 2, 8, 32>}, {transform_indices = @transform_3, window_bounds = array<i64: 2, 8>}, {transform_indices = @transform_4, window_bounds = array<i64: 2, 8, 32>}, {transform_indices = @transform_5, window_bounds = array<i64: 2, 8, 8>}]} {
    %c0 = arith.constant 0 : index
    %c0_0 = arith.constant 0 : index
    %c0_1 = arith.constant 0 : index
    %0 = vector.load %arg1[%c0, %c0_0, %c0_1] : memref<2x8x32xf32, #tpu.memory_space<vmem>>, vector<2x8x32xf32>
    %cst = arith.constant 0.176776692 : f32
    %1 = vector.broadcast %cst : f32 to vector<2x8x32xf32>
    %2 = arith.mulf %0, %1 : vector<2x8x32xf32>
    %3 = arith.truncf %2 : vector<2x8x32xf32> to vector<2x8x32xbf16>
    %c0_2 = arith.constant 0 : index
    %c0_3 = arith.constant 0 : index
    %c0_4 = arith.constant 0 : index
    %4 = vector.load %arg2[%c0_2, %c0_3, %c0_4] : memref<2x8x32xf32, #tpu.memory_space<vmem>>, vector<2x8x32xf32>
    %5 = arith.truncf %4 : vector<2x8x32xf32> to vector<2x8x32xbf16>
    "tpu.trace_start"() <{level = 10 : i32, message = "bqd,bkd->bqk"}> : () -> ()
    %cst_5 = arith.constant dense<0.000000e+00> : vector<2x8x8xf32>
    %6 = tpu.matmul %3, %5, %cst_5 {dimension_numbers = #tpu.dot_dimension_numbers<[2], [2], [1], [1], [0, 0, 0, 1, 1, 1], [0], [0]>} : vector<2x8x32xbf16>, vector<2x8x32xbf16>, vector<2x8x8xf32> -> vector<2x8x8xf32>
    "tpu.trace_stop"() : () -> ()
    %c0_6 = arith.constant 0 : index
    %c0_7 = arith.constant 0 : index
    %7 = vector.load %arg4[%c0_6, %c0_7] : memref<2x8xi8, #tpu.memory_space<vmem>>, vector<2x8xi8>
    %c0_i8 = arith.constant 0 : i8
    %8 = vector.broadcast %c0_i8 : i8 to vector<2x8xi8>
    %9 = arith.cmpi ne, %7, %8 : vector<2x8xi8>
    %10 = vector.shape_cast %9 : vector<2x8xi1> to vector<2x1x8xi1>
    %cst_8 = arith.constant -1.000000e+03 : f32
    %11 = vector.shape_cast %10 : vector<2x1x8xi1> to vector<2x1x8xi1>
    %12 = vector.broadcast %11 : vector<2x1x8xi1> to vector<2x8x8xi1>
    %13 = vector.broadcast %cst_8 : f32 to vector<2x8x8xf32>
    %14 = arith.select %12, %13, %6 : vector<2x8x8xi1>, vector<2x8x8xf32>
    %cst_9 = arith.constant dense<0xFF800000> : vector<2x8xf32>
    %15 = vector.multi_reduction <maximumf>, %14, %cst_9 [2] : vector<2x8x8xf32> to vector<2x8xf32>
    %16 = vector.shape_cast %15 : vector<2x8xf32> to vector<2x8x1xf32>
    %17 = vector.broadcast %16 : vector<2x8x1xf32> to vector<2x8x8xf32>
    %18 = arith.subf %14, %17 : vector<2x8x8xf32>
    %19 = math.exp %18 : vector<2x8x8xf32>
    %cst_10 = arith.constant dense<0.000000e+00> : vector<2x8xf32>
    %20 = vector.multi_reduction <add>, %19, %cst_10 [2] : vector<2x8x8xf32> to vector<2x8xf32>
    %21 = vector.shape_cast %20 : vector<2x8xf32> to vector<2x8x1xf32>
    %22 = tpu.reciprocal %21 : vector<2x8x1xf32> -> vector<2x8x1xf32>
    %23 = vector.broadcast %22 : vector<2x8x1xf32> to vector<2x8x8xf32>
    %24 = arith.mulf %19, %23 : vector<2x8x8xf32>
    %25 = arith.truncf %24 : vector<2x8x8xf32> to vector<2x8x8xbf16>
    %c0_11 = arith.constant 0 : index
    %c0_12 = arith.constant 0 : index
    %c0_13 = arith.constant 0 : index
    %26 = vector.load %arg3[%c0_11, %c0_12, %c0_13] : memref<2x8x32xf32, #tpu.memory_space<vmem>>, vector<2x8x32xf32>
    %27 = arith.truncf %26 : vector<2x8x32xf32> to vector<2x8x32xbf16>
    "tpu.trace_start"() <{level = 10 : i32, message = "bqk,bkd->bqd"}> : () -> ()
    %cst_14 = arith.constant dense<0.000000e+00> : vector<2x8x32xf32>
    %28 = tpu.matmul %25, %27, %cst_14 {dimension_numbers = #tpu.dot_dimension_numbers<[2], [1], [1], [2], [0, 0, 0, 1, 1, 2], [0], [0]>} : vector<2x8x8xbf16>, vector<2x8x32xbf16>, vector<2x8x32xf32> -> vector<2x8x32xf32>
    "tpu.trace_stop"() : () -> ()
    %c0_15 = arith.constant 0 : index
    %c0_16 = arith.constant 0 : index
    %c0_17 = arith.constant 0 : index
    %29 = vector.load %arg5[%c0_15, %c0_16, %c0_17] : memref<2x8x32xf32, #tpu.memory_space<vmem>>, vector<2x8x32xf32>
    tpu.vector_store %arg5[%c0_15, %c0_16, %c0_17], %28 {strides = array<i32>} : memref<2x8x32xf32, #tpu.memory_space<vmem>>, vector<2x8x32xf32>,
    %c0_18 = arith.constant 0 : index
    %c0_19 = arith.constant 0 : index
    %c0_20 = arith.constant 0 : index
    %30 = vector.load %arg6[%c0_18, %c0_19, %c0_20] : memref<2x8x8xf32, #tpu.memory_space<vmem>>, vector<2x8x8xf32>
    tpu.vector_store %arg6[%c0_18, %c0_19, %c0_20], %24 {strides = array<i32>} : memref<2x8x8xf32, #tpu.memory_space<vmem>>, vector<2x8x8xf32>,
    return
  }
  func.func @transform_0(%arg0: i32) -> (i32, i32, i32) {
    %c0_i32 = arith.constant 0 : i32
    %c0_i32_0 = arith.constant 0 : i32
    %c0_i32_1 = arith.constant 0 : i32
    return %arg0, %c0_i32, %c0_i32_0 : i32, i32, i32
  }
  func.func @transform_1(%arg0: i32) -> (i32, i32, i32) {
    %c0_i32 = arith.constant 0 : i32
    %c0_i32_0 = arith.constant 0 : i32
    %c0_i32_1 = arith.constant 0 : i32
    return %arg0, %c0_i32, %c0_i32_0 : i32, i32, i32
  }
  func.func @transform_2(%arg0: i32) -> (i32, i32, i32) {
    %c0_i32 = arith.constant 0 : i32
    %c0_i32_0 = arith.constant 0 : i32
    %c0_i32_1 = arith.constant 0 : i32
    return %arg0, %c0_i32, %c0_i32_0 : i32, i32, i32
  }
  func.func @transform_3(%arg0: i32) -> (i32, i32) {
    %c0_i32 = arith.constant 0 : i32
    %c0_i32_0 = arith.constant 0 : i32
    return %arg0, %c0_i32 : i32, i32
  }
  func.func @transform_4(%arg0: i32) -> (i32, i32, i32) {
    %c0_i32 = arith.constant 0 : i32
    %c0_i32_0 = arith.constant 0 : i32
    %c0_i32_1 = arith.constant 0 : i32
    return %arg0, %c0_i32, %c0_i32_0 : i32, i32, i32
  }
  func.func @transform_5(%arg0: i32) -> (i32, i32, i32) {
    %c0_i32 = arith.constant 0 : i32
    %c0_i32_0 = arith.constant 0 : i32
    %c0_i32_1 = arith.constant 0 : i32
    return %arg0, %c0_i32, %c0_i32_0 : i32, i32, i32
  }
}

</mosaic_0001>

<bundles_post_ra>
// kernel: tpu_custom_call.1
= control target key start
LH: loop header
LB: loop body
LE: loop exit
PB: predicated region body
PF: predicated region fallthrough
CT: control target
= control target key end

     0   :  { %11 = vsyncpa [#allocation3], 0  ;;  %s527_s0 = inlined_call_operand.hbm [shape: f32[2,8,32], index: 0, kind: input, shape index: {}]   ;;  %s528_s1 = inlined_call_operand.hbm [shape: f32[2,8,32], index: 1, kind: input, shape index: {}]   ;;  %s529_s2 = inlined_call_operand.hbm [shape: f32[2,8,32], index: 2, kind: input, shape index: {}]   ;;  %s530_s3 = inlined_call_operand.vmem [shape: s8[2,8], index: 3, kind: input, shape index: {}]   ;;  %s531_s4 = inlined_call_operand.hbm [shape: f32[2,8,32], index: 4, kind: output, shape index: {0}]   ;;  %s532_s5 = inlined_call_operand.hbm [shape: f32[2,8,8], index: 5, kind: output, shape index: {1}]  }
   0x1   :  { %12 = vsyncpa [#allocation6], 0 }
   0x2   :  { %13 = vsyncpa [#allocation4], 0 }
   0x3   :  { %14 = vsyncpa [#allocation10], 0  ;;  %s32_s20 = sshll.u32 %s528_s1, 4  ;;  %s442_s21 = smov [#allocation5]   ;;  %s33_s20 = int_to_ptr.hbm [resolvable:$true] %s32_s20 }
   0x4   :  { %s34_s22 = sshll.u32 %s442_s21, 4  ;;  %s19_s25 = sshll.u32 %s527_s0, 4  ;;  %s35_s22 = int_to_ptr.vmem [resolvable:$true] %s34_s22  ;;  %s20_s25 = int_to_ptr.hbm [resolvable:$true] %s19_s25 }
   0x5   :  { %s443_s26 = smov 128   ;;  %s444_s27 = smov 8  }
   0x6   :  { %40 = dma.hbm_to_vmem [thread:$0]  %s33_s20, 256, %s35_s22, [#allocation6], %s443_s26, %s443_s26, %s444_s27  }
   0x7   :  { %s445_s28 = smov [#allocation2]   ;;  %s45_s1 = sshll.u32 %s529_s2, 4  ;;  %s46_s1 = int_to_ptr.hbm [resolvable:$true] %s45_s1 }
   0x8   :  { %s21_s29 = sshll.u32 %s445_s28, 4  ;;  %s446_s0 = smov [#allocation7]   ;;  %s22_s29 = int_to_ptr.vmem [resolvable:$true] %s21_s29 }
   0x9   :  { %27 = dma.hbm_to_vmem [thread:$0]  %s20_s25, 256, %s22_s29, [#allocation3], %s443_s26, %s443_s26, %s444_s27  }
   0xa   :  { %s47_s7 = sshll.u32 %s446_s0, 4  ;;  %s48_s7 = int_to_ptr.vmem [resolvable:$true] %s47_s7 }
   0xb   :  { %53 = dma.hbm_to_vmem [thread:$0]  %s46_s1, 256, %s48_s7, [#allocation6], %s443_s26, %s443_s26, %s444_s27  }
   0xc   :  { %434 = dma.done.wait [#allocation3], 256  }
   0xd   :  { %435 = vsyncadd [#allocation3], 4294967040 }
   0xe   :  { %436 = dma.done.wait [#allocation6], 512  }
   0xf   :  { %437 = vsyncadd [#allocation6], 4294966784  ;;  %v77_v0 = vld [vmem:[#allocation5] sm:$0xff]  ;;  %vm81_vm0 = vcmask 261120   ;;  %v78_v1 = vld [vmem:[#allocation5 + $0x8] sm:$0xff]  ;;  %v447_v13 = vmov 0  }
  0x10   :  { %v71_v2 = vld [vmem:[#allocation2] sm:$0xff]  ;;  %v79_v3 = vpack.c.bf16 %v77_v0, %v77_v0  ;;  %v80_v4 = vpack.c.bf16 %v78_v1, %v78_v1  ;;  %v72_v5 = vld [vmem:[#allocation2 + $0x8] sm:$0xff]  ;;  %vm158_vm9 = vcmask 64512   ;;  %vm216_vm11 = vcmask 1043456   ;;  %s275_s12 = sshll.u32 %s532_s5, 4  ;;  %s449_s13 = smov [#allocation8]   ;;  %s276_s12 = int_to_ptr.hbm [resolvable:$true] %s275_s12 }
  0x11   :  { %v73_v8 = vmul.f32 0.17677669, %v71_v2  ;;  %v74_v9 = vmul.f32 0.17677669, %v72_v5  ;;  %v120_v12 = vld [vmem:[%s530_s3] sm:$0x1] }
  0x12   :  { %v86_v6 = vsel %vm81_vm0, %v79_v3, 0  ;;  %v105_v7 = vsel %vm81_vm0, %v80_v4, 0  ;;  %vm121_vm1 = vnez %v120_v12  ;;  %v209_v54 = vld [vmem:[#allocation7] sm:$0xff]  ;;  %v210_v57 = vld [vmem:[#allocation7 + $0x8] sm:$0xff]  ;;  %s448_s3 = smov [#allocation9]   ;;  %s260_s14 = sshll.u32 %s449_s13, 4  ;;  %s261_s14 = int_to_ptr.vmem [resolvable:$true] %s260_s14 }
  0x13   :  { %95 = vmatpush.bf16.xpose.msra.mxu0 %v86_v6  ;;  %114 = vmatpush.bf16.xpose.msra.mxu1 %v105_v7  ;;  %v75_v10 = vpack.c.bf16 %v73_v8, %v73_v8  ;;  %v76_v11 = vpack.c.bf16 %v74_v9, %v74_v9  ;;  %v122_v14 = vsel %vm121_vm1, 16843009, %v447_v13  ;;  %v211_v55 = vpack.c.bf16 %v209_v54, %v209_v54  ;;  %s273_s9 = sshll.u32 %s448_s3, 4  ;;  %s262_s17 = sshll.u32 %s531_s4, 4  ;;  %s274_s9 = int_to_ptr.vmem [resolvable:$true] %s273_s9  ;;  %s263_s17 = int_to_ptr.hbm [resolvable:$true] %s262_s17 }
  0x14   :  { %v128_v15 = vpack.c.b16 %v122_v14, %v122_v14  ;;  %v126_v16 = vshrl.u32 %v122_v14, 8  ;;  %v212_v58 = vpack.c.bf16 %v210_v57, %v210_v57 }
  0x15   :  { %v218_v56 = vsel %vm216_vm11, %v211_v55, 0 }
  0x16   :  { %v129_v17 = vpack.c.b8 %v128_v15, %v128_v15  ;;  %v130_v18 = vpack.c.b16 %v126_v16, %v126_v16  ;;  %227 = vmatpush.bf16.msra.mxu2 %v218_v56  ;;  %v237_v59 = vsel %vm216_vm11, %v212_v58, 0 }
  0x17   :  { %246 = vmatpush.bf16.msra.mxu3 %v237_v59 }
  0x18   :  { %vm132_vm2 = vnez %v129_v17  ;;  %v131_v19 = vpack.c.b8 %v130_v18, %v130_v18 }
  0x19   :  { %v134_v20 = vsel %vm132_vm2, 16843009, %v447_v13 }
  0x1a   :  { %294 = vmatmul.msk.bf16.vlgmr.msra.gmra.mxu0 %vm81_vm0, %v75_v10  ;;  %295 = vmatmul.msk.bf16.vlgmr.msra.gmra.mxu1 %vm81_vm0, %v76_v11  ;;  %vm133_vm3 = vnez %v131_v19  ;;  %v136_v21 = vunpack.c.0.s8 %v134_v20 }
  0x1b   :  { %v135_v22 = vsel %vm133_vm3, 16843009, %v447_v13 }
  0x1c   :  { %v138_v23 = vpack.i.b16 %v136_v21, %v136_v21  ;;  %v137_v24 = vunpack.c.0.s8 %v135_v22 }
  0x1e   :  { %v139_v25 = vpack.i.b8 %v138_v23, %v138_v23  ;;  %v140_v26 = vpack.i.b16 %v137_v24, %v137_v24 }
  0x20   :  { %vm142_vm4 = vnez %v139_v25  ;;  %v141_v27 = vpack.i.b8 %v140_v26, %v140_v26 }
  0x21   :  { %v144_v28 = vsel %vm142_vm4, 16843009, %v447_v13 }
  0x22   :  { %vm143_vm5 = vnez %v141_v27  ;;  %v146_v29 = vunpack.c.0.s8 %v144_v28 }
  0x23   :  { %v145_v30 = vsel %vm143_vm5, 16843009, %v447_v13 }
  0x24   :  { %vm148_vm6 = vcmp.ne.s32.totalorder %v146_v29, 0  ;;  %v147_v31 = vunpack.c.0.s8 %v145_v30 }
  0x25   :  { %v150_v32 = vsel %vm148_vm6, 1, %v447_v13 }
  0x26   :  { %vm149_vm7 = vcmp.ne.s32.totalorder %v147_v31, 0  ;;  %v152_v33 = vperm.slane %v150_v32, 0 }
  0x27   :  { %v151_v34 = vsel %vm149_vm7, 1, %v447_v13 }
  0x28   :  { %vm154_vm8 = vcmp.eq.s32.totalorder %v152_v33, 1  ;;  %v153_v35 = vperm.slane %v151_v34, 0 }
  0x2a   :  { %vm155_vm10 = vcmp.eq.s32.totalorder %v153_v35, 1 }
  0x97   :  { %v97_v36 = vpop.f32.mrf.mxu0  ;;  %v116_v37 = vpop.f32.mrf.mxu1 }
  0x98   :  { %v156_v38 = vsel %vm154_vm8, -1000.0, %v97_v36  ;;  %v157_v40 = vsel %vm155_vm10, -1000.0, %v116_v37 }
  0x99   :  { %v159_v39 = vsel %vm158_vm9, %v156_v38, -inf  ;;  %v162_v43 = vsel %vm158_vm9, %v157_v40, -inf }
  0x9a   :  { %160 = vmax.xlane.f32.xlu0 %v159_v39 }
  0x9f   :  { %v99_v41 = vpop.f32.mrf.mxu0  ;;  %v118_v42 = vpop.f32.mrf.mxu1 }
  0xa2   :  { %163 = vmax.xlane.f32.xlu0 %v162_v43 }
 0x10d   :  { %v161_v44 = vpop.xlane.xlu0 %160 }
 0x10e   :  { %v165_v45 = vsub.f32 %v156_v38, %v161_v44 }
 0x110   :  { %v167_v46 = vmul.f32 1.442695, %v165_v45 }
 0x112   :  { %306 = vpow2.f32 %v167_v46 }
 0x115   :  { %v164_v47 = vpop.xlane.xlu0 %163 }
 0x116   :  { %v166_v48 = vsub.f32 %v157_v40, %v164_v47 }
 0x118   :  { %v307_v49 = vpop.eup %306  ;;  %v169_v50 = vmul.f32 1.442695, %v166_v48 }
 0x119   :  { %v171_v51 = vsel %vm158_vm9, %v307_v49, 0.0 }
 0x11a   :  { %308 = vpow2.f32 %v169_v50  ;;  %172 = vadd.xlane.f32.xlu1 %v171_v51 }
 0x120   :  { %v309_v52 = vpop.eup %308 }
 0x121   :  { %v174_v53 = vsel %vm158_vm9, %v309_v52, 0.0 }
 0x122   :  { %175 = vadd.xlane.f32.xlu1 %v174_v53 }
 0x18d   :  { %v173_v60 = vpop.xlane.xlu1 %172 }
 0x18e   :  { %310 = vrcp.f32 %v173_v60  ;;  %v188_v1 = vand.u32 2147483648, %v173_v60  ;;  %v186_v3 = vand.u32 2147483647, %v173_v60  ;;  %vm182_vm13 = vweird.f32 %v173_v60 }
 0x190   :  { %v189_v6 = vor.u32 1.1754944e-38, %v188_v1  ;;  %vm187_vm15 = vcmp.eq.f32.partialorder %v186_v3, 8.507059e+37 }
 0x194   :  { %v311_v61 = vpop.eup %310 }
 0x195   :  { %v178_v62 = vmul.f32 %v311_v61, %v173_v60  ;;  %v176_v63 = vpop.xlane.xlu1 %175  ;;  %vm183_vm12 = vweird.f32 %v311_v61 }
 0x196   :  { %312 = vrcp.f32 %v176_v63  ;;  %vm184_vm14 = vmor %vm182_vm13, %vm183_vm12  ;;  %v202_v12 = vand.u32 2147483648, %v176_v63  ;;  %v200_v14 = vand.u32 2147483647, %v176_v63  ;;  %vm196_vm2 = vweird.f32 %v176_v63 }
 0x197   :  { %v179_v0 = vsub.f32 1.0, %v178_v62 }
 0x198   :  { %v203_v17 = vor.u32 1.1754944e-38, %v202_v12  ;;  %vm201_vm4 = vcmp.eq.f32.partialorder %v200_v14, 8.507059e+37 }
 0x199   :  { %v180_v2 = vmul.f32 %v311_v61, %v179_v0 }
 0x19b   :  { %v181_v4 = vadd.f32 %v311_v61, %v180_v2 }
 0x19c   :  { %v313_v5 = vpop.eup %312 }
 0x19d   :  { %v192_v7 = vmul.f32 %v313_v5, %v176_v63  ;;  %v185_v8 = vsel %vm184_vm14, %v311_v61, %v181_v4  ;;  %vm197_vm1 = vweird.f32 %v313_v5 }
 0x19e   :  { %v190_v9 = vsel %vm187_vm15, %v189_v6, %v185_v8  ;;  %vm198_vm3 = vmor %vm196_vm2, %vm197_vm1 }
 0x19f   :  { %v193_v10 = vsub.f32 1.0, %v192_v7  ;;  %v205_v11 = vmul.f32 %v307_v49, %v190_v9 }
 0x1a1   :  { %v194_v13 = vmul.f32 %v313_v5, %v193_v10  ;;  %v207_v15 = vpack.c.bf16 %v205_v11, %v205_v11  ;;  %254 = vst.msk [vmem:[#allocation9] sm:$0xff] %vm158_vm9, %v205_v11 }
 0x1a3   :  { %v195_v16 = vadd.f32 %v313_v5, %v194_v13  ;;  %296 = vmatmul.msk.bf16.vlgmr.msra.gmra.mxu2 %vm158_vm9, %v207_v15 }
 0x1a5   :  { %v199_v18 = vsel %vm198_vm3, %v313_v5, %v195_v16 }
 0x1a6   :  { %v204_v19 = vsel %vm201_vm4, %v203_v17, %v199_v18 }
 0x1a7   :  { %v206_v20 = vmul.f32 %v309_v52, %v204_v19 }
 0x1a9   :  { %v208_v21 = vpack.c.bf16 %v206_v20, %v206_v20  ;;  %255 = vst.msk [vmem:[#allocation9 + $0x8] sm:$0xff] %vm158_vm9, %v206_v20 }
 0x1aa   :  { %281 = dma.vmem_to_hbm [thread:$0]  %s274_s9, 256, %s276_s12, [#allocation10], %s443_s26, %s443_s26, %s444_s27  }
 0x1ab   :  { %297 = vmatmul.msk.bf16.vlgmr.msra.gmra.mxu3 %vm158_vm9, %v208_v21 }
 0x226   :  { %v229_v22 = vpop.f32.mrf.mxu2 }
 0x227   :  { %252 = vst.msk [vmem:[#allocation8] sm:$0xff] %vm81_vm0, %v229_v22 }
 0x22e   :  { %v231_v23 = vpop.f32.mrf.mxu2  ;;  %v248_v24 = vpop.f32.mrf.mxu3 }
 0x22f   :  { %253 = vst.msk [vmem:[#allocation8 + $0x8] sm:$0xff] %vm81_vm0, %v248_v24 }
 0x230   :  { %268 = dma.vmem_to_hbm [thread:$0]  %s261_s14, 256, %s263_s17, [#allocation4], %s443_s26, %s443_s26, %s444_s27  }
 0x236   :  { %v250_v25 = vpop.f32.mrf.mxu3 }
 0x237   :  { %438 = dma.done.wait [#allocation4], 256  }
 0x238   :  { %439 = vsyncadd [#allocation4], 4294967040 }
 0x239   :  { %440 = dma.done.wait [#allocation10], 256  }
 0x23a   :  { %441 = vsyncadd [#allocation10], 4294967040 }
 0x23b   :  { %290 = vsyncpa [#allocation3], 1 }
 0x23c   :  { %291 = vsyncpa [#allocation6], 1 }
 0x23d   :  { %292 = vsyncpa [#allocation4], 1 }
 0x23e   :  { %293 = vsyncpa [#allocation10], 1 }

</bundles_post_ra>
